<compile_context>
chip_gen: v5e
topology: v5e:2x2
jax: 0.10.0
libtpu: 0.0.40
codegen_flags: <defaults>
</compile_context>

<pallas_src>
import jax
import jax.numpy as jnp
from jax.experimental import pallas as pl
from jax.experimental.pallas import tpu as pltpu


def _abs_diff_kernel(x_ref, t_ref, o_ref):
    # Elementwise hot path: |x - t| on the whole VMEM tile (pure VPU work).
    o_ref[...] = jnp.abs(x_ref[...] - t_ref[...])


_LANE = 128
# ~1 MiB per tile; 6 buffers (2 in + 1 out, double-buffered) -> ~6 MiB VMEM.
_TARGET_TILE_BYTES = 1 << 20


def _pick_width(total):
    """Widest lane-dense slab width (multiple of 128) dividing the element count."""
    for w in (2048, 1024, 512, 256, 128):
        if total % w == 0:
            return w
    return None


def abs_diff(x, target):
    """Pallas equivalent of Abs.forward(input, target) = abs(input - target)."""
    assert x.shape == target.shape, "input and target must have the same shape"
    assert x.dtype == target.dtype

    orig_shape = x.shape
    total = x.size
    dtype = x.dtype
    itemsize = jnp.dtype(dtype).itemsize

    xf = x.reshape(-1)
    tf = target.reshape(-1)

    width = _pick_width(total)
    pad = 0
    if width is None:
        # Fallback for element counts not divisible by 128: pad the tail by
        # < 128 elements to the next lane multiple, slice it off afterwards.
        width = _LANE
        padded = pl.cdiv(total, width) * width
        pad = padded - total
        xf = jnp.pad(xf, (0, pad))
        tf = jnp.pad(tf, (0, pad))

    rows = (total + pad) // width
    x2 = xf.reshape(rows, width)
    t2 = tf.reshape(rows, width)

    # Row-block size: ~1 MiB per tile, a multiple of 8 sublanes, capped at `rows`.
    # (block_rows is either a multiple of 8 or equal to the full row extent, so
    # the (8, 128) block-shape constraint always holds.)
    target_rows = max(8, (_TARGET_TILE_BYTES // (width * itemsize)) // 8 * 8)
    block_rows = min(rows, target_rows)
    n_blocks = pl.cdiv(rows, block_rows)

    out2 = pl.pallas_call(
        _abs_diff_kernel,
        out_shape=jax.ShapeDtypeStruct((rows, width), dtype),
        grid=(n_blocks,),
        in_specs=[
            pl.BlockSpec((block_rows, width), lambda i: (i, 0)),
            pl.BlockSpec((block_rows, width), lambda i: (i, 0)),
        ],
        out_specs=pl.BlockSpec((block_rows, width), lambda i: (i, 0)),
        compiler_params=pltpu.CompilerParams(
            dimension_semantics=("parallel",),  # lets v7x shard rows over 2 TCs
        ),
    )(x2, t2)

    out = out2.reshape(-1)
    if pad:
        out = out[:total]
    return out.reshape(orig_shape)


if __name__ == "__main__":
    key = jax.random.PRNGKey(0)

    test_shapes = [
        (2, 4, 16, 16),   # main module-consistent NCHW shape (no-pad path)
        (4, 4, 32, 32),   # divisible by 2048 -> widest slab path
        (3, 5, 7, 11),    # odd element count -> small-tail pad fallback
    ]

    ok = True
    for shape in test_shapes:
        k1, k2 = jax.random.split(jax.random.fold_in(key, hash(shape) & 0x7FFFFFFF))
        x = jax.random.normal(k1, shape, dtype=jnp.float32)
        target = jax.random.normal(k2, shape, dtype=jnp.float32)

        out = abs_diff(x, target)
        jax.block_until_ready(out)

        ref = jnp.abs(x - target)
        ok = ok and (out.shape == ref.shape) and bool(
            jnp.allclose(out, ref, atol=0.0, rtol=0.0)
        )

    assert ok
    print("KERNEL_OK")
</pallas_src>

<mosaic_0001>
module attributes {stable_mosaic.version = 11 : i64} {
  func.func @_abs_diff_kernel(%arg0: i32, %arg1: memref<1x2048xf32, #tpu.memory_space<vmem>>, %arg2: memref<1x2048xf32, #tpu.memory_space<vmem>>, %arg3: memref<1x2048xf32, #tpu.memory_space<vmem>>) attributes {dimension_semantics = [#tpu.dimension_semantics<parallel>], iteration_bounds = array<i64: 1>, scalar_prefetch = 0 : i64, scratch_operands = 0 : i64, tpu.core_type = #tpu.core_type<tc>, window_params = [{transform_indices = @transform_0, window_bounds = array<i64: 1, 2048>}, {transform_indices = @transform_1, window_bounds = array<i64: 1, 2048>}, {transform_indices = @transform_2, window_bounds = array<i64: 1, 2048>}]} {
    %c0 = arith.constant 0 : index
    %c0_0 = arith.constant 0 : index
    %0 = vector.load %arg1[%c0, %c0_0] : memref<1x2048xf32, #tpu.memory_space<vmem>>, vector<1x2048xf32>
    %c0_1 = arith.constant 0 : index
    %c0_2 = arith.constant 0 : index
    %1 = vector.load %arg2[%c0_1, %c0_2] : memref<1x2048xf32, #tpu.memory_space<vmem>>, vector<1x2048xf32>
    %2 = arith.subf %0, %1 : vector<1x2048xf32>
    %3 = math.absf %2 : vector<1x2048xf32>
    %c0_3 = arith.constant 0 : index
    %c0_4 = arith.constant 0 : index
    %4 = vector.load %arg3[%c0_3, %c0_4] : memref<1x2048xf32, #tpu.memory_space<vmem>>, vector<1x2048xf32>
    tpu.vector_store %arg3[%c0_3, %c0_4], %3 {strides = array<i32>} : memref<1x2048xf32, #tpu.memory_space<vmem>>, vector<1x2048xf32>,
    return
  }
  func.func @transform_0(%arg0: i32) -> (i32, i32) {
    %c0_i32 = arith.constant 0 : i32
    %c0_i32_0 = arith.constant 0 : i32
    return %arg0, %c0_i32 : i32, i32
  }
  func.func @transform_1(%arg0: i32) -> (i32, i32) {
    %c0_i32 = arith.constant 0 : i32
    %c0_i32_0 = arith.constant 0 : i32
    return %arg0, %c0_i32 : i32, i32
  }
  func.func @transform_2(%arg0: i32) -> (i32, i32) {
    %c0_i32 = arith.constant 0 : i32
    %c0_i32_0 = arith.constant 0 : i32
    return %arg0, %c0_i32 : i32, i32
  }
}

</mosaic_0001>

<bundles_post_ra>
// kernel: tpu_custom_call.1
= control target key start
LH: loop header
LB: loop body
LE: loop exit
PB: predicated region body
PF: predicated region fallthrough
CT: control target
= control target key end

     0   :  { %7 = vsyncpa [#allocation3], 0  ;;  %s176_s0 = inlined_call_operand.hbm [shape: f32[1,2048], index: 0, kind: input, shape index: {}]   ;;  %s177_s1 = inlined_call_operand.hbm [shape: f32[1,2048], index: 1, kind: input, shape index: {}]   ;;  %s178_s2 = inlined_call_operand.hbm [shape: f32[1,2048], index: 2, kind: output, shape index: {}]  }
   0x1   :  { %8 = vsyncpa [#allocation6], 0 }
   0x2   :  { %9 = vsyncpa [#allocation4], 0  ;;  %s15_s11 = sshll.u32 %s176_s0, 4  ;;  %s149_s12 = smov [#allocation2]   ;;  %s16_s11 = int_to_ptr.hbm [resolvable:$true] %s15_s11 }
   0x3   :  { %s17_s13 = sshll.u32 %s149_s12, 4  ;;  %s26_s16 = sshll.u32 %s177_s1, 4  ;;  %s18_s13 = int_to_ptr.vmem [resolvable:$true] %s17_s13  ;;  %s27_s16 = int_to_ptr.hbm [resolvable:$true] %s26_s16 }
   0x4   :  { %20 = dma.hbm_to_vmem [thread:$0]  %s16_s11, 256, %s18_s13, [#allocation3]  }
   0x5   :  { %s150_s17 = smov [#allocation5]  }
   0x6   :  { %s28_s18 = sshll.u32 %s150_s17, 4  ;;  %s29_s18 = int_to_ptr.vmem [resolvable:$true] %s28_s18 }
   0x7   :  { %31 = dma.hbm_to_vmem [thread:$0]  %s27_s16, 256, %s29_s18, [#allocation6]  }
   0x8   :  { %143 = dma.done.wait [#allocation3], 256  }
   0x9   :  { %144 = vsyncadd [#allocation3], 4294967040 }
   0xa   :  { %145 = dma.done.wait [#allocation6], 256  }
   0xb   :  { %146 = vsyncadd [#allocation6], 4294967040  ;;  %v40_v0 = vld [vmem:[#allocation2] sm:$0xff]  ;;  %v42_v1 = vld [vmem:[#allocation5] sm:$0xff]  ;;  %s151_s0 = smov [#allocation7]   ;;  %s57_s1 = sshll.u32 %s178_s2, 4  ;;  %s58_s1 = int_to_ptr.hbm [resolvable:$true] %s57_s1 }
   0xc   :  { %v41_v2 = vld [vmem:[#allocation2 + $0x8] sm:$0xff]  ;;  %v44_v3 = vsub.f32 %v40_v0, %v42_v1  ;;  %v43_v4 = vld [vmem:[#allocation5 + $0x8] sm:$0xff]  ;;  %s55_s19 = sshll.u32 %s151_s0, 4  ;;  %s56_s19 = int_to_ptr.vmem [resolvable:$true] %s55_s19 }
   0xd   :  { %v45_v5 = vsub.f32 %v41_v2, %v43_v4 }
   0xe   :  { %v46_v6 = vand.u32 2147483647, %v44_v3 }
   0xf   :  { %v47_v7 = vand.u32 2147483647, %v45_v5 }
  0x10   :  { %48 = vst [vmem:[#allocation7] sm:$0xff] %v46_v6 }
  0x11   :  { %49 = vst [vmem:[#allocation7 + $0x8] sm:$0xff] %v47_v7 }
  0x12   :  { %60 = dma.vmem_to_hbm [thread:$0]  %s56_s19, 256, %s58_s1, [#allocation4]  }
  0x13   :  { %147 = dma.done.wait [#allocation4], 256  }
  0x14   :  { %148 = vsyncadd [#allocation4], 4294967040 }
  0x15   :  { %65 = vsyncpa [#allocation3], 1 }
  0x16   :  { %66 = vsyncpa [#allocation6], 1 }
  0x17   :  { %67 = vsyncpa [#allocation4], 1 }

</bundles_post_ra>
